<compile_context>
chip_gen: v7x
topology: tpu7x:2x2x1
jax: 0.10.0
libtpu: 0.0.40
codegen_flags: <defaults>
</compile_context>

<pallas_src>
import functools

import jax
import jax.numpy as jnp
from jax.experimental import pallas as pl
from jax.experimental.pallas import tpu as pltpu


def _actor_kernel(x_ref,
                  w1_ref, b1_ref, w2_ref, b2_ref, w3_ref, b3_ref,
                  out_ref, *, max_action):
    x = x_ref[...]
    # layer_1 + ReLU   (MXU matmul, f32 accumulation; bias/ReLU on VPU)
    h = jnp.dot(x.astype(w1_ref.dtype), w1_ref[...],
                preferred_element_type=jnp.float32) + b1_ref[...]
    h = jnp.maximum(h, 0.0)
    # layer_2 + ReLU
    h = jnp.dot(h.astype(w2_ref.dtype), w2_ref[...],
                preferred_element_type=jnp.float32) + b2_ref[...]
    h = jnp.maximum(h, 0.0)
    # layer_3 (kept f32) + max_action * tanh (tanh on EUP)
    y = jnp.dot(h, w3_ref[...], preferred_element_type=jnp.float32) + b3_ref[...]
    out_ref[...] = max_action * jnp.tanh(y)


def _round_up(n, m):
    return -(-n // m) * m


def _pad2(a, rows, cols):
    r, c = a.shape
    if (r, c) == (rows, cols):
        return a
    return jnp.pad(a, ((0, rows - r), (0, cols - c)))


def _pick_batch_tile(B, tm_max=2048):
    """Largest multiple-of-8 divisor of B that is <= tm_max and <= B//2.

    Preferring grid >= 2 lets the "parallel" batch axis be split across
    v7x's two TensorCores; big tiles keep the activation DMAs near roofline
    and amortize the ~0.35us per-grid-step overhead.  Falls back to the full
    batch (single full-array block, always legal) when no such tile exists.
    """
    best = 0
    hi = min(tm_max, B // 2)
    for tm in range(8, hi + 1, 8):
        if B % tm == 0:
            best = tm
    return best if best else B


def actor_forward(x, params, max_action, *, tm=None, weights_dtype=jnp.float32):
    """Pallas equivalent of Actor.forward(x).

    params hold canonical (in_features, out_features) weights and (1, out)
    biases; all lane padding happens here in the wrapper.
    Set weights_dtype=jnp.bfloat16 for bf16 matmul inputs on the two big
    layers (f32 accumulation kept; last layer stays f32).
    """
    B, state_dim = x.shape
    h1 = params["w1"].shape[1]                 # 400
    h2 = params["w2"].shape[1]                 # 300
    action_dim = params["w3"].shape[1]

    H1 = _round_up(h1, 128)                    # 400 -> 512
    H2 = _round_up(h2, 128)                    # 300 -> 384
    OUT = _round_up(action_dim, 128)           # 8   -> 128 (lane-dense store)

    # Zero-pad to lane multiples (exact: ReLU(0)=0, zero rows/cols add 0,
    # tanh(0)=0 so padded output columns are 0 and are sliced off below).
    w1 = _pad2(params["w1"], state_dim, H1).astype(weights_dtype)
    b1 = _pad2(params["b1"], 1, H1).astype(jnp.float32)
    w2 = _pad2(params["w2"], H1, H2).astype(weights_dtype)
    b2 = _pad2(params["b2"], 1, H2).astype(jnp.float32)
    w3 = _pad2(params["w3"], H2, OUT).astype(jnp.float32)   # last layer f32
    b3 = _pad2(params["b3"], 1, OUT).astype(jnp.float32)

    if tm is None:
        tm = _pick_batch_tile(B)
    assert B % tm == 0, "batch tile must evenly divide the batch"
    grid = (B // tm,)

    def act_spec(feat):
        return pl.BlockSpec((tm, feat), lambda i: (i, 0))

    def const_spec(shape):
        # Constant block index -> weights/biases stay VMEM-resident across the
        # batch-tile loop (loaded once, never re-DMA'd).
        return pl.BlockSpec(shape, lambda i: (0, 0))

    operands = [x, w1, b1, w2, b2, w3, b3]
    in_specs = [act_spec(state_dim)] + [const_spec(op.shape) for op in operands[1:]]

    # Advisory cost hint for XLA's scheduler (this kernel is latency-bound at
    # typical RL batch sizes).
    flops = 2 * B * (state_dim * h1 + h1 * h2 + h2 * action_dim)
    bytes_accessed = int(sum(op.size * op.dtype.itemsize for op in operands)
                         + B * OUT * 4)
    cost = pl.CostEstimate(flops=flops, transcendentals=B * action_dim,
                           bytes_accessed=bytes_accessed)

    kernel = functools.partial(_actor_kernel, max_action=float(max_action))

    out = pl.pallas_call(
        kernel,
        out_shape=jax.ShapeDtypeStruct((B, OUT), jnp.float32),
        grid=grid,
        in_specs=in_specs,
        out_specs=act_spec(OUT),
        compiler_params=pltpu.CompilerParams(
            dimension_semantics=("parallel",),     # shard batch tiles on v7x's 2 TCs
            vmem_limit_bytes=32 * 1024 * 1024),    # portable across v5e/v6e/v7x
        cost_estimate=cost,
    )(*operands)

    return out[:, :action_dim]


def init_actor_params(key, state_dim, action_dim):
    """nn.Linear-style init (uniform +/- 1/sqrt(fan_in)).

    Weights stored canonically as (in_features, out_features); biases (1, out).
    """
    dims = [
        (state_dim, 400),   # layer_1
        (400, 300),         # layer_2
        (300, action_dim),  # layer_3
    ]
    params = {}
    for idx, (fan_in, fan_out) in enumerate(dims, start=1):
        key, kw, kb = jax.random.split(key, 3)
        bound = 1.0 / jnp.sqrt(jnp.float32(fan_in))
        params[f"w{idx}"] = jax.random.uniform(
            kw, (fan_in, fan_out), jnp.float32, -bound, bound)
        params[f"b{idx}"] = jax.random.uniform(
            kb, (1, fan_out), jnp.float32, -bound, bound)
    return params


def actor_forward_ref(x, params, max_action):
    """Pure-JAX reference for correctness check."""
    h = jnp.maximum(x @ params["w1"] + params["b1"], 0.0)
    h = jnp.maximum(h @ params["w2"] + params["b2"], 0.0)
    return max_action * jnp.tanh(h @ params["w3"] + params["b3"])


if __name__ == "__main__":
    state_dim, action_dim, batch = 16, 8, 16
    max_action = 2.0

    key = jax.random.PRNGKey(0)
    kx, kp = jax.random.split(key, 2)
    x = jax.random.normal(kx, (batch, state_dim), jnp.float32)
    params = init_actor_params(kp, state_dim, action_dim)

    out_ref = actor_forward_ref(x, params, max_action)

    # Default tile picker: B=16 -> tm=8, grid=(2,). Exercises the batch-tiled
    # path and gives v7x two tiles to split across its TensorCores.
    out = jax.block_until_ready(actor_forward(x, params, max_action))
    assert out.shape == (batch, action_dim)
    assert jnp.allclose(out, out_ref, atol=1e-4, rtol=1e-4)

    # Single-step (full-batch block) path.
    out_full = jax.block_until_ready(
        actor_forward(x, params, max_action, tm=batch))
    assert jnp.allclose(out_full, out_ref, atol=1e-4, rtol=1e-4)

    # Optional bf16 weight path (f32 accumulation, layer 3 kept f32): relaxed
    # tolerance per review (~1e-2 relative expected with K up to 512).
    out_bf16 = jax.block_until_ready(
        actor_forward(x, params, max_action, weights_dtype=jnp.bfloat16))
    assert jnp.allclose(out_bf16, out_ref, atol=5e-2, rtol=5e-2)

    print("KERNEL_OK")
</pallas_src>

<mosaic_0001>
module attributes {stable_mosaic.version = 11 : i64} {
  func.func @_actor_kernel(%arg0: i32, %arg1: memref<8x16xf32, #tpu.memory_space<vmem>>, %arg2: memref<16x512xf32, #tpu.memory_space<vmem>>, %arg3: memref<1x512xf32, #tpu.memory_space<vmem>>, %arg4: memref<512x384xf32, #tpu.memory_space<vmem>>, %arg5: memref<1x384xf32, #tpu.memory_space<vmem>>, %arg6: memref<384x128xf32, #tpu.memory_space<vmem>>, %arg7: memref<1x128xf32, #tpu.memory_space<vmem>>, %arg8: memref<8x128xf32, #tpu.memory_space<vmem>>) attributes {dimension_semantics = [#tpu.dimension_semantics<parallel>], iteration_bounds = array<i64: 2>, scalar_prefetch = 0 : i64, scratch_operands = 0 : i64, tpu.core_type = #tpu.core_type<tc>, window_params = [{transform_indices = @transform_0, window_bounds = array<i64: 8, 16>}, {pipeline_mode = #tpu.pipeline_mode<synchronous>, transform_indices = @transform_1, window_bounds = array<i64: 16, 512>}, {pipeline_mode = #tpu.pipeline_mode<synchronous>, transform_indices = @transform_2, window_bounds = array<i64: 1, 512>}, {pipeline_mode = #tpu.pipeline_mode<synchronous>, transform_indices = @transform_3, window_bounds = array<i64: 512, 384>}, {pipeline_mode = #tpu.pipeline_mode<synchronous>, transform_indices = @transform_4, window_bounds = array<i64: 1, 384>}, {pipeline_mode = #tpu.pipeline_mode<synchronous>, transform_indices = @transform_5, window_bounds = array<i64: 384, 128>}, {pipeline_mode = #tpu.pipeline_mode<synchronous>, transform_indices = @transform_6, window_bounds = array<i64: 1, 128>}, {transform_indices = @transform_7, window_bounds = array<i64: 8, 128>}]} {
    %c0 = arith.constant 0 : index
    %c0_0 = arith.constant 0 : index
    %0 = vector.load %arg1[%c0, %c0_0] : memref<8x16xf32, #tpu.memory_space<vmem>>, vector<8x16xf32>
    %c0_1 = arith.constant 0 : index
    %c0_2 = arith.constant 0 : index
    %1 = vector.load %arg2[%c0_1, %c0_2] : memref<16x512xf32, #tpu.memory_space<vmem>>, vector<16x512xf32>
    %cst = arith.constant dense<0.000000e+00> : vector<8x512xf32>
    %2 = tpu.matmul %0, %1, %cst {dimension_numbers = #tpu.dot_dimension_numbers<[1], [0], [0], [1], [0, 0, 1, 1], [], []>} : vector<8x16xf32>, vector<16x512xf32>, vector<8x512xf32> -> vector<8x512xf32>
    %c0_3 = arith.constant 0 : index
    %c0_4 = arith.constant 0 : index
    %3 = vector.load %arg3[%c0_3, %c0_4] : memref<1x512xf32, #tpu.memory_space<vmem>>, vector<1x512xf32>
    %4 = vector.broadcast %3 : vector<1x512xf32> to vector<8x512xf32>
    %5 = arith.addf %2, %4 : vector<8x512xf32>
    %cst_5 = arith.constant 0.000000e+00 : f32
    %6 = vector.broadcast %cst_5 : f32 to vector<8x512xf32>
    %7 = arith.maximumf %5, %6 : vector<8x512xf32>
    %c0_6 = arith.constant 0 : index
    %c0_7 = arith.constant 0 : index
    %8 = vector.load %arg4[%c0_6, %c0_7] : memref<512x384xf32, #tpu.memory_space<vmem>>, vector<512x384xf32>
    %cst_8 = arith.constant dense<0.000000e+00> : vector<8x384xf32>
    %9 = tpu.matmul %7, %8, %cst_8 {dimension_numbers = #tpu.dot_dimension_numbers<[1], [0], [0], [1], [0, 0, 1, 1], [], []>} : vector<8x512xf32>, vector<512x384xf32>, vector<8x384xf32> -> vector<8x384xf32>
    %c0_9 = arith.constant 0 : index
    %c0_10 = arith.constant 0 : index
    %10 = vector.load %arg5[%c0_9, %c0_10] : memref<1x384xf32, #tpu.memory_space<vmem>>, vector<1x384xf32>
    %11 = vector.broadcast %10 : vector<1x384xf32> to vector<8x384xf32>
    %12 = arith.addf %9, %11 : vector<8x384xf32>
    %cst_11 = arith.constant 0.000000e+00 : f32
    %13 = vector.broadcast %cst_11 : f32 to vector<8x384xf32>
    %14 = arith.maximumf %12, %13 : vector<8x384xf32>
    %c0_12 = arith.constant 0 : index
    %c0_13 = arith.constant 0 : index
    %15 = vector.load %arg6[%c0_12, %c0_13] : memref<384x128xf32, #tpu.memory_space<vmem>>, vector<384x128xf32>
    %cst_14 = arith.constant dense<0.000000e+00> : vector<8x128xf32>
    %16 = tpu.matmul %14, %15, %cst_14 {dimension_numbers = #tpu.dot_dimension_numbers<[1], [0], [0], [1], [0, 0, 1, 1], [], []>} : vector<8x384xf32>, vector<384x128xf32>, vector<8x128xf32> -> vector<8x128xf32>
    %c0_15 = arith.constant 0 : index
    %c0_16 = arith.constant 0 : index
    %17 = vector.load %arg7[%c0_15, %c0_16] : memref<1x128xf32, #tpu.memory_space<vmem>>, vector<1x128xf32>
    %18 = vector.broadcast %17 : vector<1x128xf32> to vector<8x128xf32>
    %19 = arith.addf %16, %18 : vector<8x128xf32>
    %20 = math.tanh %19 : vector<8x128xf32>
    %cst_17 = arith.constant 2.000000e+00 : f32
    %21 = vector.broadcast %cst_17 : f32 to vector<8x128xf32>
    %22 = arith.mulf %21, %20 : vector<8x128xf32>
    %c0_18 = arith.constant 0 : index
    %c0_19 = arith.constant 0 : index
    %23 = vector.load %arg8[%c0_18, %c0_19] : memref<8x128xf32, #tpu.memory_space<vmem>>, vector<8x128xf32>
    tpu.vector_store %arg8[%c0_18, %c0_19], %22 {strides = array<i32>} : memref<8x128xf32, #tpu.memory_space<vmem>>, vector<8x128xf32>,
    return
  }
  func.func @transform_0(%arg0: i32) -> (i32, i32) {
    %c0_i32 = arith.constant 0 : i32
    %c0_i32_0 = arith.constant 0 : i32
    return %arg0, %c0_i32 : i32, i32
  }
  func.func @transform_1(%arg0: i32) -> (i32, i32) {
    %c0_i32 = arith.constant 0 : i32
    %c0_i32_0 = arith.constant 0 : i32
    %c0_i32_1 = arith.constant 0 : i32
    return %c0_i32, %c0_i32_0 : i32, i32
  }
  func.func @transform_2(%arg0: i32) -> (i32, i32) {
    %c0_i32 = arith.constant 0 : i32
    %c0_i32_0 = arith.constant 0 : i32
    %c0_i32_1 = arith.constant 0 : i32
    return %c0_i32, %c0_i32_0 : i32, i32
  }
  func.func @transform_3(%arg0: i32) -> (i32, i32) {
    %c0_i32 = arith.constant 0 : i32
    %c0_i32_0 = arith.constant 0 : i32
    %c0_i32_1 = arith.constant 0 : i32
    return %c0_i32, %c0_i32_0 : i32, i32
  }
  func.func @transform_4(%arg0: i32) -> (i32, i32) {
    %c0_i32 = arith.constant 0 : i32
    %c0_i32_0 = arith.constant 0 : i32
    %c0_i32_1 = arith.constant 0 : i32
    return %c0_i32, %c0_i32_0 : i32, i32
  }
  func.func @transform_5(%arg0: i32) -> (i32, i32) {
    %c0_i32 = arith.constant 0 : i32
    %c0_i32_0 = arith.constant 0 : i32
    %c0_i32_1 = arith.constant 0 : i32
    return %c0_i32, %c0_i32_0 : i32, i32
  }
  func.func @transform_6(%arg0: i32) -> (i32, i32) {
    %c0_i32 = arith.constant 0 : i32
    %c0_i32_0 = arith.constant 0 : i32
    %c0_i32_1 = arith.constant 0 : i32
    return %c0_i32, %c0_i32_0 : i32, i32
  }
  func.func @transform_7(%arg0: i32) -> (i32, i32) {
    %c0_i32 = arith.constant 0 : i32
    %c0_i32_0 = arith.constant 0 : i32
    return %arg0, %c0_i32 : i32, i32
  }
}

</mosaic_0001>

<bundles_post_ra>
// kernel: tpu_custom_call.1
= control target key start
LH: loop header
LB: loop body
LE: loop exit
PB: predicated region body
PF: predicated region fallthrough
CT: control target
= control target key end

     0   :  { %s2393_s0 = inlined_call_operand.hbm [shape: f32[16,16], index: 0, kind: input, shape index: {}]   ;;  %s2394_s1 = inlined_call_operand.hbm [shape: f32[16,512], index: 1, kind: input, shape index: {}]   ;;  %s2395_s2 = inlined_call_operand.vmem [shape: f32[1,512], index: 2, kind: input, shape index: {}]   ;;  %s2396_s3 = inlined_call_operand.hbm [shape: f32[512,384], index: 3, kind: input, shape index: {}]   ;;  %s2397_s4 = inlined_call_operand.vmem [shape: f32[1,384], index: 4, kind: input, shape index: {}]   ;;  %s2398_s5 = inlined_call_operand.hbm [shape: f32[384,128], index: 5, kind: input, shape index: {}]   ;;  %s2399_s6 = inlined_call_operand.vmem [shape: f32[1,128], index: 6, kind: input, shape index: {}]   ;;  %s2400_s7 = inlined_call_operand.hbm [shape: f32[16,128], index: 7, kind: output, shape index: {}]  }
   0x1   :  { %2404 = sst [smem:[#allocation15_spill]] %s2394_s1 }
   0x2   :  { %12 = vsyncpa [#allocation3], 0 }
   0x3   :  { %14 = vsyncpa [#allocation3 + $0x1], 0 }
   0x4   :  { %15 = vsyncpa [#allocation6], 0 }
   0x5   :  { %16 = vsyncpa [#allocation9], 0 }
   0x6   :  { %17 = vsyncpa [#allocation4], 0 }
   0x7   :  { %19 = vsyncpa [#allocation4 + $0x1], 0  ;;  %s2094_s24 = smov 0   ;;  %s2096_s25 = smov 0  }
   0x8   :  { %s2098_s26 = smov 0   ;;  %s2100_s27 = smov 0  }
   0x9 LB: > { %s2115_s28 = sadd.s32 4294967295, %s2038_s27   ;;  %s1324_s29 = sadd.s32 4294967294, %s2038_s27   ;;  %s2038_s27 = sphi %s2100_s27, %s2425_s27   ;;  %s2034_s26 = sphi %s2098_s26, %s2424_s26   ;;  %s2030_s25 = sphi %s2096_s25, %s2423_s25   ;;  %s2026_s24 = sphi %s2094_s24, %s2422_s24  }
   0xa   : > { %p45_p0 = scmp.ne.s32.totalorder %s2030_s25, %s2026_s24  ;;  %p2401_p1 = scmp.eq.s32.totalorder %s2115_s28, 0 }
   0xb   : > { %p201_p3 = scmp.eq.s32.totalorder %s1324_s29, 1  ;;  %p1325_p5 = scmp.ge.s32.totalorder %s2038_s27, 1 }
   0xc   : > { %p2124_p4 = por %p2401_p1, %p45_p0  ;;  %p208_p7 = scmp.lt.s32.totalorder %s2038_s27, 3 }
   0xd   : > { %p2129_p6 = por %p201_p3, %p45_p0  ;;  %s2040_s10 = smov [#allocation5]  }
   0xe   : > { %s2405_s30 = scalar_select %p2124_p4, 1, 0 }
   0xf   : > { %s2406_s8 = scalar_select %p2129_p6, 1, 0 }
  0x10   : > { %p2134_p8 = pnand %p1325_p5, %p208_p7  ;;  %s220_s11 = sshll.u32 %s2040_s10, 4  ;;  %s2138_s11 = int_to_ptr.vmem [resolvable:$true] %s220_s11 }
  0x11   : > { %s2041_s13 = smov [#allocation7]   ;;  %s2409_s1 = sld [smem:[#allocation15_spill]] }
  0x12   : > { %s2407_s9 = scalar_select %p2134_p8, 1, 0 }
  0x13   : > { %p1778_p9 = pneg %p2134_p8  ;;  %s236_s14 = sshll.u32 %s2041_s13, 4  ;;  %s2149_s14 = int_to_ptr.vmem [resolvable:$true] %s236_s14 }
  0x15   : > { %p2145_p11 = pnand %p1778_p9, %p2401_p1 }
  0x17   : > { %s1850_s17 = scalar_lea.hbm %s2409_s1, 1024  ;;  %p2159_p13 = pneg %p2145_p11 }
  0x18   : > { %p1851_p12 = scmp.ne.s32.totalorder %s2409_s1, %s1850_s17  ;;  %p1857_p5 = scmp.lt.u32.totalorder %s1850_s17, %s2409_s1 }
  0x1a   : > { %p1853_p0 = pnand %p2159_p13, %p1851_p12 }
  0x1c   : > { %p1854_p3 = pneg %p1853_p0 }
  0x1e   : > { %p1859_p7 = pnand %p1857_p5, %p1854_p3 }
  0x20   : > { %1862 = shalt.err (!%p1859_p7)
}
  0x21   : > { %s1863_s23 = scalar_lea.vmem %s2138_s11, 1024  ;;  %p1871_p2 = scmp.lt.s32.totalorder %s2138_s11, %s2138_s11 }
  0x22   : > { %p1864_p9 = scmp.ne.s32.totalorder %s2138_s11, %s1863_s23  ;;  %p1872_p6 = scmp.lt.s32.totalorder %s1863_s23, %s1863_s23 }
  0x24   : > { %p1866_p10 = pnand %p1864_p9, %p2159_p13  ;;  %p1873_p12 = por %p1872_p6, %p1871_p2 }
  0x26   : > { %p1867_p1 = pneg %p1866_p10 }
  0x28   : > { %p1874_p0 = pnand %p1873_p12, %p1867_p1 }
  0x2a   : > { %1877 = shalt.err (!%p1874_p0)
}
  0x2b   : > { %s2042_s29 = smov 512   ;;  %s2043_s10 = smov 32  }
  0x2c   : > { %1781 = dma.hbm_to_vmem [thread:$0]  (!%p2145_p11), %s2409_s1, 1024, %s2138_s11, [#allocation6], %s2042_s29, %s2042_s29, %s2043_s10  }
  0x2d   : > { %s1878_s18 = scalar_lea.hbm %s2396_s3, 24576 }
  0x2e   : > { %p1879_p2 = scmp.ne.s32.totalorder %s2396_s3, %s1878_s18  ;;  %p1885_p10 = scmp.lt.u32.totalorder %s1878_s18, %s2396_s3 }
  0x30   : > { %p1881_p1 = pnand %p1879_p2, %p2159_p13 }
  0x32   : > { %p1882_p6 = pneg %p1881_p1 }
  0x34   : > { %p1887_p3 = pnand %p1885_p10, %p1882_p6 }
  0x36   : > { %1890 = shalt.err (!%p1887_p3)
}
  0x37   : > { %s1891_s11 = scalar_lea.vmem %s2149_s14, 24576  ;;  %p1899_p12 = scmp.lt.s32.totalorder %s2149_s14, %s2149_s14 }
  0x38   : > { %p1892_p5 = scmp.ne.s32.totalorder %s2149_s14, %s1891_s11  ;;  %p1900_p0 = scmp.lt.s32.totalorder %s1891_s11, %s1891_s11 }
  0x3a   : > { %p1894_p7 = pnand %p1892_p5, %p2159_p13  ;;  %p1901_p2 = por %p1900_p0, %p1899_p12 }
  0x3c   : > { %p1895_p9 = pneg %p1894_p7 }
  0x3e   : > { %p1902_p1 = pnand %p1901_p2, %p1895_p9 }
  0x40   : > { %1905 = shalt.err (!%p1902_p1)
}
  0x41   : > { %s2044_s29 = smov 384   ;;  %s2045_s10 = smov 24  }
  0x42   : > { %1784 = dma.hbm_to_vmem [thread:$0]  (!%p2145_p11), %s2396_s3, 24576, %s2149_s14, [#allocation6], %s2044_s29, %s2044_s29, %s2045_s10  }
  0x43   : > { %s2046_s16 = smov [#allocation8]   ;;  %s1906_s21 = scalar_lea.hbm %s2398_s5, 6144 }
  0x44   : > { %s252_s17 = sshll.u32 %s2046_s16, 4  ;;  %p1907_p6 = scmp.ne.s32.totalorder %s2398_s5, %s1906_s21  ;;  %s253_s17 = int_to_ptr.vmem [resolvable:$true] %s252_s17 }
  0x45   : > { %p1913_p5 = scmp.lt.u32.totalorder %s1906_s21, %s2398_s5 }
  0x46   : > { %p1909_p10 = pnand %p1907_p6, %p2159_p13 }
  0x48   : > { %p1910_p3 = pneg %p1909_p10 }
  0x4a   : > { %p1915_p7 = pnand %p1913_p5, %p1910_p3 }
  0x4c   : > { %1918 = shalt.err (!%p1915_p7)
}
  0x4d   : > { %s1919_s14 = scalar_lea.vmem %s253_s17, 6144  ;;  %p1927_p2 = scmp.lt.s32.totalorder %s253_s17, %s253_s17 }
  0x4e   : > { %p1920_p9 = scmp.ne.s32.totalorder %s253_s17, %s1919_s14  ;;  %p1928_p1 = scmp.lt.s32.totalorder %s1919_s14, %s1919_s14 }
  0x50   : > { %p1922_p12 = pnand %p1920_p9, %p2159_p13  ;;  %p1929_p4 = por %p1928_p1, %p1927_p2 }
  0x52   : > { %p1923_p0 = pneg %p1922_p12 }
  0x54   : > { %p1930_p8 = pnand %p1929_p4, %p1923_p0 }
  0x56   : > { %1933 = shalt.err (!%p1930_p8)
}
  0x57   : > { %s2047_s29 = smov 128   ;;  %s2048_s1 = smov 8  }
  0x58   : > { %1787 = dma.hbm_to_vmem [thread:$0]  (!%p2145_p11), %s2398_s5, 6144, %s253_s17, [#allocation9], %s2047_s29, %s2047_s29, %s2048_s1  }
  0x59   : > { %s2222_s13 = sadd.s32 1, %s2038_s27   ;;  %s32_s16 = sadd.s32 1, %s2034_s26 }
  0x5a   : > { %s29_s15 = ssub.s32 %s2038_s27, %s2222_s13  ;;  %p39_p8 = scmp.ne.s32.totalorder %s2034_s26, %s2030_s25 }
  0x5b   : > { %p30_p4 = scmp.eq.s32.totalorder %s29_s15, 0  ;;  %p40_p13 = scmp.eq.s32.totalorder %s2038_s27, 0 }
  0x5c   : > { %p1799_p6 = scmp.lt.s32.totalorder %s2038_s27, 2  ;;  %p2411_p3 = scmp.eq.s32.totalorder %s2115_s28, 1 }
  0x5d   : > { %s2232_s18 = scalar_select %p30_p4, %s2034_s26, %s32_s16  }
  0x5e   : > { %p41_p10 = por %p40_p13, %p39_p8  ;;  %p2236_p5 = por %p2411_p3, %p39_p8 }
  0x5f   : > { %s269_s12 = sand.u32 1, %s2034_s26   ;;  %s1331_s21 = sshll.u32 %s2038_s27, 7 }
  0x60   : > { %s1330_s17 = sshll.u32 %s269_s12, 3  ;;  %s2245_s11 = scalar_lea.hbm %s2393_s0, %s1331_s21 }
  0x61   : > { %s273_s14 = scalar_lea.vmem [#allocation2], %s1330_s17  ;;  %p2247_p11 = pnand %p1799_p6, %p41_p10 }
  0x62   : > { %s280_s29 = sshll.u32 %s273_s14, 4  ;;  %s270_s20 = scalar_lea.sflag [#allocation3], %s269_s12  ;;  %s2251_s29 = int_to_ptr.vmem [resolvable:$true] %s280_s29 }
  0x63   : > { %s1934_s10 = scalar_lea.hbm %s2245_s11, 128  ;;  %p1936_p9 = pneg %p2247_p11 }
  0x64   : > { %p1935_p7 = scmp.ne.s32.totalorder %s2245_s11, %s1934_s10  ;;  %s1939_s21 = scalar_lea.hbm %s2393_s0, 256 }
  0x65   : > { %p1940_p2 = scmp.lt.u32.totalorder %s2245_s11, %s2393_s0  ;;  %p1941_p1 = scmp.lt.u32.totalorder %s1939_s21, %s1934_s10 }
  0x66   : > { %p1937_p12 = pnand %p1936_p9, %p1935_p7  ;;  %p1943_p8 = scmp.lt.u32.totalorder %s1934_s10, %s2245_s11 }
  0x67   : > { %p1942_p4 = por %p1941_p1, %p1940_p2 }
  0x68   : > { %p1938_p0 = pneg %p1937_p12 }
  0x69   : > { %p1944_p13 = por %p1943_p8, %p1942_p4 }
  0x6b   : > { %p1945_p6 = pnand %p1944_p13, %p1938_p0 }
  0x6d   : > { %1948 = shalt.err (!%p1945_p6)
}
  0x6e   : > { %s1949_s12 = scalar_lea.vmem %s2251_s29, 128  ;;  %s2049_s23 = smov [#allocation2]  }
  0x6f   : > { %p1950_p10 = scmp.ne.s32.totalorder %s2251_s29, %s1949_s12  ;;  %s1954_s14 = sshll.u32 %s2049_s23, 4  ;;  %s1955_s14 = int_to_ptr.vmem [resolvable:$false] %s1954_s14 }
  0x70   : > { %s1956_s15 = scalar_lea.vmem %s1955_s14, 256  ;;  %p1957_p12 = scmp.lt.s32.totalorder %s2251_s29, %s1955_s14 }
  0x71   : > { %p1952_p3 = pnand %p1950_p10, %p1936_p9  ;;  %p1958_p2 = scmp.lt.s32.totalorder %s1956_s15, %s1949_s12 }
  0x73   : > { %p1953_p7 = pneg %p1952_p3  ;;  %p1959_p1 = por %p1958_p2, %p1957_p12 }
  0x75   : > { %p1960_p4 = pnand %p1959_p1, %p1953_p7 }
  0x77   : > { %1963 = shalt.err (!%p1960_p4)
}
  0x78   : > { %1791 = dma.hbm_to_vmem [thread:$0]  (!%p2247_p11), %s2245_s11, 128, %s2251_s29, %s270_s20  }
  0x79   : > { %p2414_p0 = scmp.ne.s32.totalorder %s2407_s9, 0 }
  0x7a   : > { %s2281_s10 = sand.u32 (!%p2414_p0), 1, %s2030_s25   ;;  %p2415_p9 = scmp.ne.s32.totalorder (!%p2414_p0), %s2405_s30, 0 }
  0x7b   : > { %289 = sbr.rel (%p2414_p0) target bundleno = 919 (0x397), region = 48  ;;  %s1333_s16 = sshll.u32 (!%p2414_p0), %s2281_s10, 3 }
  0x7c   : > { %s292_s21 = scalar_lea.sflag (!%p2414_p0), [#allocation3], %s2281_s10  ;;  %s295_s17 = scalar_lea.vmem (!%p2414_p0), [#allocation2], %s1333_s16 }
  0x82   : > { %2009 = dma.done.wait (%p2415_p9), %s292_s21, 128  }
  0x83   : > { %2011 = vsyncadd (%p2415_p9), %s292_s21, 4294967168  ;;  %p2416_p11 = scmp.eq.s32.totalorder %s2115_s28, 0 }
  0x85   : > { %2013 = dma.done.wait (%p2416_p11), [#allocation6], 25600   ;;  %p2417_p8 = pmov %p2416_p11 }
  0x87   : > { %2015 = vsyncadd (%p2417_p8), [#allocation6], 4294941696  ;;  %p2418_p13 = pmov %p2417_p8 }
  0x88   : > { %p2419_p6 = pmov %p2417_p8 }
  0x89   : > { %2017 = dma.done.wait (%p2418_p13), [#allocation9], 6144  }
  0x8a   : > { %2019 = vsyncadd (%p2419_p6), [#allocation9], 4294961152  ;;  %v2050_v0 = vmov 0.0   ;;  %v340_v1 = vld [vmem:[#allocation5 + $0x8] sm:$0xff]  ;;  %v339_v3 = vld [vmem:[#allocation5] sm:$0xff]  ;;  %vm369_vm0 = vcmask 130048  }
  0x8b   : > { %437 = vmatprep.mubr.f32.mxu0 %v2050_v0  ;;  %508 = vmatprep.mubr.f32.mxu1 %v2050_v0  ;;  %v344_v2 = vld [vmem:[#allocation5 + $0x28] sm:$0xff]  ;;  %v343_v5 = vld [vmem:[#allocation5 + $0x20] sm:$0xff]  ;;  %v342_v6 = vld [vmem:[#allocation5 + $0x18] sm:$0xff]  ;;  %vm2052_vm1 = vmmov 0   ;;  %s1342_s22 = sshll.u32 %s2115_s28, 7  ;;  %s337_s12 = scalar_lea.vmem [#allocation10], %s1333_s16 }
  0x8c   : > { %v1502_v4 = vpack.c.bf16 %v344_v2, %v340_v1  ;;  %v1504_v7 = vpack.c.bf16 %v343_v5, %v339_v3  ;;  %v338_v8 = vld [vmem:[%s295_s17] sm:$0xff]  ;;  %v520_v14 = vld [vmem:[#allocation7 + $0x8] sm:$0xff]  ;;  %v523_v15 = vld [vmem:[#allocation7 + $0x20] sm:$0xff]  ;;  %s1225_s23 = sshll.u32 %s337_s12, 4  ;;  %s2349_s21 = scalar_lea.hbm %s2400_s7, %s1342_s22  ;;  %s2351_s23 = int_to_ptr.vmem [resolvable:$true] %s1225_s23 }
  0x8d   : > { %v346_v9 = vld [vmem:[#allocation5 + $0x38] sm:$0xff]  ;;  %v341_v10 = vld [vmem:[#allocation5 + $0x10] sm:$0xff]  ;;  %v519_v16 = vld [vmem:[#allocation7] sm:$0xff]  ;;  %v1510_v17 = vpack.c.bf16 %v523_v15, %v520_v14  ;;  %s1212_s17 = scalar_lea.sflag [#allocation4], %s2281_s10  ;;  %s1964_s30 = scalar_lea.vmem %s2351_s23, 128 }
  0x8e   : > { %v345_v11 = vld [vmem:[#allocation5 + $0x30] sm:$0xff]  ;;  %1503 = vmatprep.subr.bf16.mxu0 %v1502_v4  ;;  %v1506_v12 = vpack.c.bf16 %v346_v9, %v342_v6  ;;  %v522_v18 = vld [vmem:[#allocation7 + $0x18] sm:$0xff]  ;;  %v528_v24 = vld [vmem:[#allocation7 + $0x48] sm:$0xff]  ;;  %p1965_p10 = scmp.ne.s32.totalorder %s2351_s23, %s1964_s30  ;;  %s2053_s28 = smov [#allocation10]  }
  0x8f   : > { %v1508_v13 = vpack.c.bf16 %v345_v11, %v341_v10  ;;  %1505 = vmatpush1.bf16.msra.mxu0 %v1504_v7  ;;  %v526_v19 = vld [vmem:[#allocation7 + $0x38] sm:$0xff]  ;;  %v529_v20 = vld [vmem:[#allocation7 + $0x50] sm:$0xff]  ;;  %v1512_v21 = vpack.c.bf16 %v522_v18, %v519_v16  ;;  %v532_v25 = vld [vmem:[#allocation7 + $0x68] sm:$0xff]  ;;  %s1968_s16 = sshll.u32 %s2053_s28, 4  ;;  %s1969_s16 = int_to_ptr.vmem [resolvable:$false] %s1968_s16 }
  0x90   : > { %1507 = vmatprep.subr.bf16.mxu1 %v1506_v12  ;;  %v1514_v22 = vpack.c.bf16 %v529_v20, %v526_v19  ;;  %v525_v23 = vld [vmem:[#allocation7 + $0x30] sm:$0xff]  ;;  %1511 = vmatprep.subr.bf16.mxu0 %v1510_v17  ;;  %v535_v26 = vld [vmem:[#allocation7 + $0x80] sm:$0xff]  ;;  %v534_v30 = vld [vmem:[#allocation7 + $0x78] sm:$0xff]  ;;  %p1966_p3 = pnand %p1965_p10, %p2236_p5  ;;  %s1970_s9 = scalar_lea.vmem %s1969_s16, 256 }
  0x91   : > { %1509 = vmatpush1.bf16.msra.mxu1 %v1508_v13  ;;  %v1516_v27 = vpack.c.bf16 %v528_v24, %v525_v23  ;;  %v1518_v28 = vpack.c.bf16 %v535_v26, %v532_v25  ;;  %v531_v29 = vld [vmem:[#allocation7 + $0x60] sm:$0xff]  ;;  %v538_v31 = vld [vmem:[#allocation7 + $0x98] sm:$0xff]  ;;  %v541_v32 = vld [vmem:[#allocation7 + $0xb0] sm:$0xff]  ;;  %p1971_p12 = scmp.lt.s32.totalorder %s2351_s23, %s1969_s16  ;;  %p1972_p2 = scmp.lt.s32.totalorder %s1970_s9, %s1964_s30 }
  0x92   : > { %1338 = vmatmul.mubr.msk.f32.vlgmr.msra.gmra.mrb[0].mxu0 %vm369_vm0, %v338_v8  ;;  %v1520_v33 = vpack.c.bf16 %v534_v30, %v531_v29  ;;  %v1522_v34 = vpack.c.bf16 %v541_v32, %v538_v31  ;;  %v537_v35 = vld [vmem:[#allocation7 + $0x90] sm:$0xff]  ;;  %v540_v36 = vld [vmem:[#allocation7 + $0xa8] sm:$0xff]  ;;  %v547_v38 = vld [vmem:[#allocation7 + $0xe0] sm:$0xff]  ;;  %p1967_p7 = pneg %p1966_p3 }
  0x93   : > { %1513 = vmatpush1.bf16.msra.mxu0 %v1512_v21  ;;  %v544_v37 = vld [vmem:[#allocation7 + $0xc8] sm:$0xff]  ;;  %v569_v39 = vld [vmem:[#allocation7 + $0x190] sm:$0xff]  ;;  %v1524_v43 = vpack.c.bf16 %v540_v36, %v537_v35  ;;  %v543_v44 = vld [vmem:[#allocation7 + $0xc0] sm:$0xff]  ;;  %p1973_p1 = por %p1972_p2, %p1971_p12 }
  0x94   : > { %1339 = vmatmul.mubr.msk.f32.vlgmr.msra.gmra.mrb[0].mxu1 %vm369_vm0, %v338_v8  ;;  %1515 = vmatprep.subr.bf16.mxu0 %v1514_v22  ;;  %v572_v40 = vld [vmem:[#allocation7 + $0x1a8] sm:$0xff]  ;;  %v521_v42 = vld [vmem:[#allocation7 + $0x10] sm:$0xff]  ;;  %v546_v45 = vld [vmem:[#allocation7 + $0xd8] sm:$0xff]  ;;  %v1526_v47 = vpack.c.bf16 %v547_v38, %v544_v37 }
  0x95   : > { %v1638_v41 = vpack.c.bf16 %v572_v40, %v569_v39  ;;  %v524_v46 = vld [vmem:[#allocation7 + $0x28] sm:$0xff]  ;;  %v550_v48 = vld [vmem:[#allocation7 + $0xf8] sm:$0xff]  ;;  %v575_v50 = vld [vmem:[#allocation7 + $0x1c0] sm:$0xff]  ;;  %v1528_v58 = vpack.c.bf16 %v546_v45, %v543_v44  ;;  %p1974_p4 = pnand %p1973_p1, %p1967_p7 }
  0x96   : > { %v1640_v49 = vpack.c.bf16 %v524_v46, %v521_v42  ;;  %v578_v51 = vld [vmem:[#allocation7 + $0x1d8] sm:$0xff]  ;;  %v553_v52 = vld [vmem:[#allocation7 + $0x110] sm:$0xff]  ;;  %v527_v54 = vld [vmem:[#allocation7 + $0x40] sm:$0xff] }
  0x97   : > { %1517 = vmatpush1.bf16.msra.mxu0 %v1516_v27  ;;  %1639 = vmatprep.subr.bf16.mxu1 %v1638_v41  ;;  %v1642_v53 = vpack.c.bf16 %v578_v51, %v575_v50  ;;  %v530_v55 = vld [vmem:[#allocation7 + $0x58] sm:$0xff]  ;;  %v581_v57 = vld [vmem:[#allocation7 + $0x1f0] sm:$0xff]  ;;  %v552_v60 = vld [vmem:[#allocation7 + $0x108] sm:$0xff]  ;;  %v1530_v62 = vpack.c.bf16 %v553_v52, %v550_v48 }
  0x98   : > { %1519 = vmatprep.subr.bf16.mxu0 %v1518_v28  ;;  %1641 = vmatpush3.bf16.msra.mxu1 %v1640_v49  ;;  %v1644_v56 = vpack.c.bf16 %v530_v55, %v527_v54  ;;  %v549_v59 = vld [vmem:[#allocation7 + $0xf0] sm:$0xff]  ;;  %v584_v61 = vld [vmem:[#allocation7 + $0x208] sm:$0xff]  ;;  %v559_v4 = vld [vmem:[#allocation7 + $0x140] sm:$0xff] }
  0x99   : > { %1643 = vmatprep.subr.bf16.mxu1 %v1642_v53  ;;  %v556_v63 = vld [vmem:[#allocation7 + $0x128] sm:$0xff]  ;;  %v1646_v1 = vpack.c.bf16 %v584_v61, %v581_v57  ;;  %v533_v2 = vld [vmem:[#allocation7 + $0x70] sm:$0xff]  ;;  %v587_v5 = vld [vmem:[#allocation7 + $0x220] sm:$0xff]  ;;  %v1532_v8 = vpack.c.bf16 %v552_v60, %v549_v59 }
  0x9a   : > { %v536_v3 = vld [vmem:[#allocation7 + $0x88] sm:$0xff]  ;;  %v590_v6 = vld [vmem:[#allocation7 + $0x238] sm:$0xff]  ;;  %v555_v9 = vld [vmem:[#allocation7 + $0x120] sm:$0xff]  ;;  %v1534_v13 = vpack.c.bf16 %v559_v4, %v556_v63 }
  0x9b   : > { %1521 = vmatpush1.bf16.msra.mxu0 %v1520_v33  ;;  %v1648_v7 = vpack.c.bf16 %v536_v3, %v533_v2  ;;  %v1650_v10 = vpack.c.bf16 %v590_v6, %v587_v5  ;;  %v539_v11 = vld [vmem:[#allocation7 + $0xa0] sm:$0xff]  ;;  %v542_v12 = vld [vmem:[#allocation7 + $0xb8] sm:$0xff]  ;;  %v593_v15 = vld [vmem:[#allocation7 + $0x250] sm:$0xff] }
  0x9c   : > { %1523 = vmatprep.subr.bf16.mxu0 %v1522_v34  ;;  %1645 = vmatpush3.bf16.msra.mxu1 %v1644_v56  ;;  %v558_v14 = vld [vmem:[#allocation7 + $0x138] sm:$0xff]  ;;  %v596_v16 = vld [vmem:[#allocation7 + $0x268] sm:$0xff]  ;;  %v565_v18 = vld [vmem:[#allocation7 + $0x170] sm:$0xff]  ;;  %v1652_v19 = vpack.c.bf16 %v542_v12, %v539_v11 }
  0x9d   : > { %1647 = vmatprep.subr.bf16.mxu1 %v1646_v1  ;;  %v562_v17 = vld [vmem:[#allocation7 + $0x158] sm:$0xff]  ;;  %v1536_v20 = vpack.c.bf16 %v558_v14, %v555_v9  ;;  %v561_v21 = vld [vmem:[#allocation7 + $0x150] sm:$0xff]  ;;  %v1654_v22 = vpack.c.bf16 %v596_v16, %v593_v15  ;;  %v548_v24 = vld [vmem:[#allocation7 + $0xe8] sm:$0xff] }
  0x9e   : > { %v545_v23 = vld [vmem:[#allocation7 + $0xd0] sm:$0xff]  ;;  %v1538_v25 = vpack.c.bf16 %v565_v18, %v562_v17  ;;  %v564_v26 = vld [vmem:[#allocation7 + $0x168] sm:$0xff]  ;;  %v599_v27 = vld [vmem:[#allocation7 + $0x280] sm:$0xff] }
  0x9f   : > { %1525 = vmatpush1.bf16.msra.mxu0 %v1524_v43  ;;  %v602_v28 = vld [vmem:[#allocation7 + $0x298] sm:$0xff]  ;;  %v568_v29 = vld [vmem:[#allocation7 + $0x188] sm:$0xff]  ;;  %v571_v30 = vld [vmem:[#allocation7 + $0x1a0] sm:$0xff]  ;;  %v1656_v31 = vpack.c.bf16 %v548_v24, %v545_v23  ;;  %v1540_v32 = vpack.c.bf16 %v564_v26, %v561_v21 }
  0xa0   : > { %1527 = vmatprep.subr.bf16.mxu0 %v1526_v47  ;;  %1649 = vmatpush3.bf16.msra.mxu1 %v1648_v7  ;;  %v567_v33 = vld [vmem:[#allocation7 + $0x180] sm:$0xff]  ;;  %v1658_v34 = vpack.c.bf16 %v602_v28, %v599_v27  ;;  %v554_v36 = vld [vmem:[#allocation7 + $0x118] sm:$0xff]  ;;  %v1542_v37 = vpack.c.bf16 %v571_v30, %v568_v29  ;;  %v605_v39 = vld [vmem:[#allocation7 + $0x2b0] sm:$0xff] }
  0xa1   : > { %1651 = vmatprep.subr.bf16.mxu1 %v1650_v10  ;;  %v551_v35 = vld [vmem:[#allocation7 + $0x100] sm:$0xff]  ;;  %v570_v38 = vld [vmem:[#allocation7 + $0x198] sm:$0xff]  ;;  %v608_v40 = vld [vmem:[#allocation7 + $0x2c8] sm:$0xff] }
  0xa2   : > { %v574_v41 = vld [vmem:[#allocation7 + $0x1b8] sm:$0xff]  ;;  %v577_v42 = vld [vmem:[#allocation7 + $0x1d0] sm:$0xff]  ;;  %v1660_v43 = vpack.c.bf16 %v554_v36, %v551_v35  ;;  %v1544_v44 = vpack.c.bf16 %v570_v38, %v567_v33  ;;  %v1662_v45 = vpack.c.bf16 %v608_v40, %v605_v39  ;;  %v560_v47 = vld [vmem:[#allocation7 + $0x148] sm:$0xff]  ;;  %v349_v38 = vlaneseq }
  0xa3   : > { %1529 = vmatpush1.bf16.msra.mxu0 %v1528_v58  ;;  %v557_v46 = vld [vmem:[#allocation7 + $0x130] sm:$0xff]  ;;  %v1546_v48 = vpack.c.bf16 %v577_v42, %v574_v41  ;;  %v576_v50 = vld [vmem:[#allocation7 + $0x1c8] sm:$0xff]  ;;  %v583_v52 = vld [vmem:[#allocation7 + $0x200] sm:$0xff] }
  0xa4   : > { %1531 = vmatprep.subr.bf16.mxu0 %v1530_v62  ;;  %1653 = vmatpush3.bf16.msra.mxu1 %v1652_v19  ;;  %v573_v49 = vld [vmem:[#allocation7 + $0x1b0] sm:$0xff]  ;;  %v580_v51 = vld [vmem:[#allocation7 + $0x1e8] sm:$0xff]  ;;  %v1664_v53 = vpack.c.bf16 %v560_v47, %v557_v46  ;;  %v579_v56 = vld [vmem:[#allocation7 + $0x1e0] sm:$0xff]  ;;  %v2303_v39 = vshrl.u32 %v349_v38, 7 }
  0xa5   : > { %1655 = vmatprep.subr.bf16.mxu1 %v1654_v22  ;;  %v1548_v54 = vpack.c.bf16 %v576_v50, %v573_v49  ;;  %v1550_v55 = vpack.c.bf16 %v583_v52, %v580_v51  ;;  %v582_v57 = vld [vmem:[#allocation7 + $0x1f8] sm:$0xff]  ;;  %v589_v59 = vld [vmem:[#allocation7 + $0x230] sm:$0xff]  ;;  %v588_v63 = vld [vmem:[#allocation7 + $0x228] sm:$0xff] }
  0xa6   : > { %v586_v58 = vld [vmem:[#allocation7 + $0x218] sm:$0xff]  ;;  %v1552_v60 = vpack.c.bf16 %v582_v57, %v579_v56  ;;  %v585_v62 = vld [vmem:[#allocation7 + $0x210] sm:$0xff]  ;;  %v592_v1 = vld [vmem:[#allocation7 + $0x248] sm:$0xff]  ;;  %v351_v40 = vsub.s32 0, %v2303_v39  ;;  %v355_v42 = vsub.s32 1, %v2303_v39 }
  0xa7   : > { %1533 = vmatpush1.bf16.msra.mxu0 %v1532_v8  ;;  %v1554_v61 = vpack.c.bf16 %v589_v59, %v586_v58  ;;  %v595_v2 = vld [vmem:[#allocation7 + $0x260] sm:$0xff]  ;;  %v1556_v3 = vpack.c.bf16 %v588_v63, %v585_v62  ;;  %v594_v6 = vld [vmem:[#allocation7 + $0x258] sm:$0xff]  ;;  %v601_v8 = vld [vmem:[#allocation7 + $0x290] sm:$0xff] }
  0xa8   : > { %1535 = vmatprep.subr.bf16.mxu0 %v1534_v13  ;;  %1657 = vmatpush3.bf16.msra.mxu1 %v1656_v31  ;;  %v1558_v4 = vpack.c.bf16 %v595_v2, %v592_v1  ;;  %v591_v5 = vld [vmem:[#allocation7 + $0x240] sm:$0xff]  ;;  %v598_v7 = vld [vmem:[#allocation7 + $0x278] sm:$0xff]  ;;  %v597_v11 = vld [vmem:[#allocation7 + $0x270] sm:$0xff] }
  0xa9   : > { %1659 = vmatprep.subr.bf16.mxu1 %v1658_v34  ;;  %v1560_v9 = vpack.c.bf16 %v594_v6, %v591_v5  ;;  %v1562_v10 = vpack.c.bf16 %v601_v8, %v598_v7  ;;  %v600_v12 = vld [vmem:[#allocation7 + $0x288] sm:$0xff]  ;;  %v607_v14 = vld [vmem:[#allocation7 + $0x2c0] sm:$0xff]  ;;  %v606_v18 = vld [vmem:[#allocation7 + $0x2b8] sm:$0xff] }
  0xaa   : > { %v604_v13 = vld [vmem:[#allocation7 + $0x2a8] sm:$0xff]  ;;  %v1564_v15 = vpack.c.bf16 %v600_v12, %v597_v11  ;;  %v603_v17 = vld [vmem:[#allocation7 + $0x2a0] sm:$0xff]  ;;  %v613_v21 = vld [vmem:[#allocation7 + $0x2f0] sm:$0xff] }
  0xab   : > { %1537 = vmatpush1.bf16.msra.mxu0 %v1536_v20  ;;  %v1566_v16 = vpack.c.bf16 %v607_v14, %v604_v13  ;;  %v1568_v19 = vpack.c.bf16 %v606_v18, %v603_v17  ;;  %v610_v20 = vld [vmem:[#allocation7 + $0x2d8] sm:$0xff]  ;;  %v611_v22 = vld [vmem:[#allocation7 + $0x2e0] sm:$0xff]  ;;  %v612_v26 = vld [vmem:[#allocation7 + $0x2e8] sm:$0xff] }
  0xac   : > { %1539 = vmatprep.subr.bf16.mxu0 %v1538_v25  ;;  %1661 = vmatpush3.bf16.msra.mxu1 %v1660_v43  ;;  %v1570_v23 = vpack.c.bf16 %v613_v21, %v610_v20  ;;  %v614_v24 = vld [vmem:[#allocation7 + $0x2f8] sm:$0xff]  ;;  %v609_v25 = vld [vmem:[#allocation7 + $0x2d0] sm:$0xff]  ;;  %v563_v29 = vld [vmem:[#allocation7 + $0x160] sm:$0xff]  ;;  %v363_v43 = vsub.s32 3, %v2303_v39 }
  0xad   : > { %1663 = vmatprep.subr.bf16.mxu1 %v1662_v45  ;;  %v1666_v27 = vpack.c.bf16 %v614_v24, %v611_v22  ;;  %v1572_v28 = vpack.c.bf16 %v612_v26, %v609_v25  ;;  %v566_v30 = vld [vmem:[#allocation7 + $0x178] sm:$0xff]  ;;  %v619_v33 = vld [vmem:[#allocation7 + $0x320] sm:$0xff]  ;;  %v665_v34 = vld [vmem:[#allocation7 + $0x490] sm:$0xff] }
  0xae   : > { %v1668_v31 = vpack.c.bf16 %v566_v30, %v563_v29  ;;  %v668_v36 = vld [vmem:[#allocation7 + $0x4a8] sm:$0xff]  ;;  %v2309_v41 = vld [vmem:[%s2395_s2] sm:$0xf]  ;;  %v615_v47 = vld [vmem:[#allocation7 + $0x300] sm:$0xff] }
  0xaf   : > { %1541 = vmatpush1.bf16.msra.mxu0 %v1540_v32  ;;  %v616_v32 = vld [vmem:[#allocation7 + $0x308] sm:$0xff]  ;;  %v356_v45 = vrot.slane %v2309_v41, %v355_v42  ;;  %v364_v49 = vrot.slane %v2309_v41, %v363_v43  ;;  %v617_v52 = vld [vmem:[#allocation7 + $0x310] sm:$0xff]  ;;  %v671_v57 = vld [vmem:[#allocation7 + $0x4c0] sm:$0xff] }
  0xb0   : > { %1543 = vmatprep.subr.bf16.mxu0 %v1542_v37  ;;  %1665 = vmatpush3.bf16.msra.mxu1 %v1664_v53  ;;  %v1574_v35 = vpack.c.bf16 %v619_v33, %v616_v32  ;;  %v1670_v37 = vpack.c.bf16 %v668_v36, %v665_v34  ;;  %v620_v53 = vld [vmem:[#allocation7 + $0x328] sm:$0xff]  ;;  %v625_v56 = vld [vmem:[#allocation7 + $0x350] sm:$0xff]  ;;  %v674_v58 = vld [vmem:[#allocation7 + $0x4d8] sm:$0xff] }
  0xb1   : > { %1667 = vmatprep.subr.bf16.mxu1 %v1666_v27  ;;  %v1672_v63 = vpack.c.bf16 %v620_v53, %v617_v52  ;;  %v621_v1 = vld [vmem:[#allocation7 + $0x330] sm:$0xff]  ;;  %v624_v2 = vld [vmem:[#allocation7 + $0x348] sm:$0xff]  ;;  %v1674_v6 = vpack.c.bf16 %v674_v58, %v671_v57  ;;  %v623_v7 = vld [vmem:[#allocation7 + $0x340] sm:$0xff] }
  0xb2   : > { %v626_v8 = vld [vmem:[#allocation7 + $0x358] sm:$0xff]  ;;  %v677_v11 = vld [vmem:[#allocation7 + $0x4f0] sm:$0xff]  ;;  %v680_v12 = vld [vmem:[#allocation7 + $0x508] sm:$0xff]  ;;  %v1580_v14 = vpack.c.bf16 %v624_v2, %v621_v1 }
  0xb3   : > { %1545 = vmatpush1.bf16.msra.mxu0 %v1544_v44  ;;  %v352_v44 = vrot.slane %v2309_v41, %v351_v40  ;;  %v630_v17 = vld [vmem:[#allocation7 + $0x378] sm:$0xff]  ;;  %v629_v20 = vld [vmem:[#allocation7 + $0x370] sm:$0xff]  ;;  %v632_v21 = vld [vmem:[#allocation7 + $0x388] sm:$0xff] }
  0xb4   : > { %1547 = vmatprep.subr.bf16.mxu0 %v1546_v48  ;;  %1669 = vmatpush3.bf16.msra.mxu1 %v1668_v31  ;;  %v618_v48 = vld [vmem:[#allocation7 + $0x318] sm:$0xff]  ;;  %v683_v24 = vld [vmem:[#allocation7 + $0x520] sm:$0xff]  ;;  %v1680_v27 = vpack.c.bf16 %v632_v21, %v629_v20  ;;  %v636_v29 = vld [vmem:[#allocation7 + $0x3a8] sm:$0xff] }
  0xb5   : > { %1671 = vmatprep.subr.bf16.mxu1 %v1670_v37  ;;  %v1576_v62 = vpack.c.bf16 %v618_v48, %v615_v47  ;;  %v634_v22 = vld [vmem:[#allocation7 + $0x398] sm:$0xff]  ;;  %v635_v32 = vld [vmem:[#allocation7 + $0x3a0] sm:$0xff]  ;;  %v640_v34 = vld [vmem:[#allocation7 + $0x3c8] sm:$0xff] }
  0xb6   : > { %v686_v25 = vld [vmem:[#allocation7 + $0x538] sm:$0xff]  ;;  %v689_v36 = vld [vmem:[#allocation7 + $0x550] sm:$0xff]  ;;  %v692_v37 = vld [vmem:[#allocation7 + $0x568] sm:$0xff] }
  0xb7   : > { %1549 = vmatpush1.bf16.msra.mxu0 %v1548_v54  ;;  %v622_v54 = vld [vmem:[#allocation7 + $0x338] sm:$0xff]  ;;  %v1682_v31 = vpack.c.bf16 %v686_v25, %v683_v24  ;;  %v1686_v47 = vpack.c.bf16 %v692_v37, %v689_v36  ;;  %v641_v48 = vld [vmem:[#allocation7 + $0x3d0] sm:$0xff]  ;;  %v695_v52 = vld [vmem:[#allocation7 + $0x580] sm:$0xff] }
  0xb8   : > { %1551 = vmatprep.subr.bf16.mxu0 %v1550_v55  ;;  %v1578_v5 = vpack.c.bf16 %v625_v56, %v622_v54  ;;  %v638_v33 = vld [vmem:[#allocation7 + $0x3b8] sm:$0xff]  ;;  %v645_v56 = vld [vmem:[#allocation7 + $0x3f0] sm:$0xff]  ;;  %v648_v57 = vld [vmem:[#allocation7 + $0x408] sm:$0xff] }
  0xb9   : > { %v1684_v43 = vpack.c.bf16 %v638_v33, %v635_v32  ;;  %v698_v53 = vld [vmem:[#allocation7 + $0x598] sm:$0xff]  ;;  %v655_v1 = vld [vmem:[#allocation7 + $0x440] sm:$0xff]  ;;  %v701_v2 = vld [vmem:[#allocation7 + $0x5b0] sm:$0xff] }
  0xba   : > { %v657_v20 = vld [vmem:[#allocation7 + $0x450] sm:$0xff]  ;;  %v659_v24 = vld [vmem:[#allocation7 + $0x460] sm:$0xff]  ;;  %v662_v25 = vld [vmem:[#allocation7 + $0x478] sm:$0xff] }
  0xbb   : > { %1553 = vmatpush1.bf16.msra.mxu0 %v1552_v60  ;;  %v666_v32 = vld [vmem:[#allocation7 + $0x498] sm:$0xff] }
  0xbc   : > { %1555 = vmatprep.subr.bf16.mxu0 %v1554_v61  ;;  %v670_v33 = vld [vmem:[#allocation7 + $0x4b8] sm:$0xff] }
  0xbf   : > { %1557 = vmatpush1.bf16.msra.mxu0 %v1556_v3 }
  0xc0   : > { %1559 = vmatprep.subr.bf16.mxu0 %v1558_v4 }
  0xc3   : > { %1561 = vmatpush1.bf16.msra.mxu0 %v1560_v9  ;;  %v628_v9 = vld [vmem:[#allocation7 + $0x368] sm:$0xff] }
  0xc4   : > { %1563 = vmatprep.subr.bf16.mxu0 %v1562_v10  ;;  %v631_v10 = vld [vmem:[#allocation7 + $0x380] sm:$0xff] }
  0xc5   : > { %v1582_v18 = vpack.c.bf16 %v631_v10, %v628_v9 }
  0xc7   : > { %1565 = vmatpush1.bf16.msra.mxu0 %v1564_v15  ;;  %v1676_v15 = vpack.c.bf16 %v626_v8, %v623_v7  ;;  %v651_v7 = vld [vmem:[#allocation7 + $0x420] sm:$0xff]  ;;  %v654_v8 = vld [vmem:[#allocation7 + $0x438] sm:$0xff] }
  0xc8   : > { %1567 = vmatprep.subr.bf16.mxu0 %v1566_v16  ;;  %v627_v16 = vld [vmem:[#allocation7 + $0x360] sm:$0xff] }
  0xc9   : > { %v1584_v26 = vpack.c.bf16 %v630_v17, %v627_v16  ;;  %v710_v16 = vld [vmem:[#allocation7 + $0x5f8] sm:$0xff] }
  0xcb   : > { %1569 = vmatpush1.bf16.msra.mxu0 %v1568_v19  ;;  %v1678_v19 = vpack.c.bf16 %v680_v12, %v677_v11  ;;  %v653_v11 = vld [vmem:[#allocation7 + $0x430] sm:$0xff]  ;;  %v656_v12 = vld [vmem:[#allocation7 + $0x448] sm:$0xff] }
  0xcc   : > { %1571 = vmatprep.subr.bf16.mxu0 %v1570_v23  ;;  %v637_v23 = vld [vmem:[#allocation7 + $0x3b0] sm:$0xff] }
  0xcd   : > { %v1586_v30 = vpack.c.bf16 %v637_v23, %v634_v22  ;;  %v660_v23 = vld [vmem:[#allocation7 + $0x468] sm:$0xff] }
  0xcf   : > { %1573 = vmatpush1.bf16.msra.mxu0 %v1572_v28  ;;  %v633_v28 = vld [vmem:[#allocation7 + $0x390] sm:$0xff] }
  0xd0   : > { %1575 = vmatprep.subr.bf16.mxu0 %v1574_v35  ;;  %v643_v35 = vld [vmem:[#allocation7 + $0x3e0] sm:$0xff]  ;;  %v1588_v38 = vpack.c.bf16 %v636_v29, %v633_v28  ;;  %v1700_v29 = vpack.c.bf16 %v662_v25, %v659_v24  ;;  %v1031_v25 = vld [vmem:[#allocation8 + $0x90] sm:$0xff] }
 0x165   : > { %v439_v46 = vpop.f32.mrb[0].mxu0 }
 0x166   : > { %v440_v50 = vadd.f32 %v439_v46, %v352_v44  ;;  %v441_v51 = vpop.f32.mrb[1].mxu0  ;;  %v639_v44 = vld [vmem:[#allocation7 + $0x3c0] sm:$0xff]  ;;  %v1590_v46 = vpack.c.bf16 %v643_v35, %v640_v34  ;;  %v673_v34 = vld [vmem:[#allocation7 + $0x4d0] sm:$0xff] }
 0x167   : > { %v442_v55 = vadd.f32 %v441_v51, %v356_v45  ;;  %v2320_v59 = vpop.f32.mrb[0].mxu1  ;;  %v642_v45 = vld [vmem:[#allocation7 + $0x3d8] sm:$0xff]  ;;  %v649_v51 = vld [vmem:[#allocation7 + $0x410] sm:$0xff]  ;;  %v1610_v37 = vpack.c.bf16 %v673_v34, %v670_v33  ;;  %v1017_v33 = vld [vmem:[#allocation8 + $0x20] sm:$0xff] }
 0x168   : > { %v512_v60 = vpop.f32.mrb[1].mxu1  ;;  %v515_v4 = vmax.f32 %v440_v50, 0.0  ;;  %v646_v50 = vld [vmem:[#allocation7 + $0x3f8] sm:$0xff]  ;;  %v1592_v54 = vpack.c.bf16 %v642_v45, %v639_v44  ;;  %v679_v44 = vld [vmem:[#allocation7 + $0x500] sm:$0xff]  ;;  %v1018_v34 = vld [vmem:[#allocation8 + $0x28] sm:$0xff] }
 0x169   : > { %v516_v61 = vmax.f32 %v442_v55, 0.0  ;;  %v513_v3 = vadd.f32 %v512_v60, %v364_v49  ;;  %v644_v49 = vld [vmem:[#allocation7 + $0x3e8] sm:$0xff]  ;;  %v1594_v58 = vpack.c.bf16 %v649_v51, %v646_v50  ;;  %v1690_v60 = vpack.c.bf16 %v698_v53, %v695_v52  ;;  %v685_v50 = vld [vmem:[#allocation7 + $0x530] sm:$0xff] }
 0x16a   : > { %v1688_v55 = vpack.c.bf16 %v644_v49, %v641_v48  ;;  %v678_v48 = vld [vmem:[#allocation7 + $0x4f8] sm:$0xff]  ;;  %v681_v53 = vld [vmem:[#allocation7 + $0x510] sm:$0xff] }
 0x16b   : > { %792 = vmatprep.mubr.f32.mxu0 %v516_v61  ;;  %934 = vmatprep.mubr.f32.mxu1 %v516_v61  ;;  %v518_v13 = vmax.f32 %v513_v3, 0.0  ;;  %v647_v61 = vld [vmem:[#allocation7 + $0x400] sm:$0xff]  ;;  %v704_v3 = vld [vmem:[#allocation7 + $0x5c8] sm:$0xff]  ;;  %v682_v49 = vld [vmem:[#allocation7 + $0x518] sm:$0xff] }
 0x16c   : > { %793 = vmatmul.mubr.f32.vlgmr.msra.gmra.mrb[2].mxu0 %v515_v4  ;;  %935 = vmatmul.mubr.f32.vlgmr.msra.gmra.mrb[2].mxu1 %v515_v4  ;;  %v359_v4 = vsub.s32 2, %v2303_v39  ;;  %v1694_v10 = vpack.c.bf16 %v704_v3, %v701_v2  ;;  %v1618_v52 = vpack.c.bf16 %v685_v50, %v682_v49  ;;  %v693_v3 = vld [vmem:[#allocation7 + $0x570] sm:$0xff]  ;;  %v1022_v49 = vld [vmem:[#allocation8 + $0x48] sm:$0xff]  ;;  %v1049_v39 = vld [vmem:[#allocation8 + $0x120] sm:$0xff] }
 0x16d   : > { %1577 = vmatpush1.bf16.msra.mxu0 %v1576_v62  ;;  %1673 = vmatpush3.bf16.msra.mxu1 %v1672_v63  ;;  %v650_v62 = vld [vmem:[#allocation7 + $0x418] sm:$0xff]  ;;  %v652_v63 = vld [vmem:[#allocation7 + $0x428] sm:$0xff]  ;;  %v1039_v50 = vld [vmem:[#allocation8 + $0xd0] sm:$0xff] }
 0x16e   : > { %1579 = vmatprep.subr.bf16.mxu0 %v1578_v5  ;;  %1675 = vmatprep.subr.bf16.mxu1 %v1674_v6  ;;  %v1596_v5 = vpack.c.bf16 %v648_v57, %v645_v56  ;;  %v1692_v6 = vpack.c.bf16 %v650_v62, %v647_v61  ;;  %v1598_v9 = vpack.c.bf16 %v655_v1, %v652_v63  ;;  %v691_v56 = vld [vmem:[#allocation7 + $0x560] sm:$0xff]  ;;  %v690_v61 = vld [vmem:[#allocation7 + $0x558] sm:$0xff]  ;;  %v697_v63 = vld [vmem:[#allocation7 + $0x590] sm:$0xff] }
 0x16f   : > { %1004 = vmatprep.mubr.f32.mxu1 %v518_v13  ;;  %863 = vmatprep.mubr.f32.mxu0 %v518_v13  ;;  %v658_v13 = vld [vmem:[#allocation7 + $0x458] sm:$0xff]  ;;  %v360_v17 = vrot.slane %v2309_v41, %v359_v4  ;;  %v1604_v41 = vpack.c.bf16 %v660_v23, %v657_v20  ;;  %v1030_v20 = vld [vmem:[#allocation8 + $0x88] sm:$0xff] }
 0x170   : > { %v694_v62 = vld [vmem:[#allocation7 + $0x578] sm:$0xff]  ;;  %v1014_v23 = vld [vmem:[#allocation8 + $0x8] sm:$0xff] }
 0x171   : > { %1581 = vmatpush1.bf16.msra.mxu0 %v1580_v14  ;;  %1677 = vmatpush3.bf16.msra.mxu1 %v1676_v15  ;;  %v661_v14 = vld [vmem:[#allocation7 + $0x470] sm:$0xff]  ;;  %v707_v15 = vld [vmem:[#allocation7 + $0x5e0] sm:$0xff]  ;;  %v2327_v28 = vadd.f32 %v2320_v59, %v360_v17  ;;  %v1626_v2 = vpack.c.bf16 %v697_v63, %v694_v62  ;;  %v708_v17 = vld [vmem:[#allocation7 + $0x5e8] sm:$0xff] }
 0x172   : > { %1583 = vmatprep.subr.bf16.mxu0 %v1582_v18  ;;  %1679 = vmatprep.subr.bf16.mxu1 %v1678_v19  ;;  %v1600_v18 = vpack.c.bf16 %v654_v8, %v651_v7  ;;  %v1696_v19 = vpack.c.bf16 %v656_v12, %v653_v11  ;;  %v1602_v21 = vpack.c.bf16 %v661_v14, %v658_v13  ;;  %v669_v59 = vld [vmem:[#allocation7 + $0x4b0] sm:$0xff]  ;;  %v703_v7 = vld [vmem:[#allocation7 + $0x5c0] sm:$0xff]  ;;  %v702_v11 = vld [vmem:[#allocation7 + $0x5b8] sm:$0xff] }
 0x173   : > { %v1698_v22 = vpack.c.bf16 %v710_v16, %v707_v15  ;;  %v517_v35 = vmax.f32 %v2327_v28, 0.0  ;;  %v706_v12 = vld [vmem:[#allocation7 + $0x5d8] sm:$0xff]  ;;  %v709_v13 = vld [vmem:[#allocation7 + $0x5f0] sm:$0xff]  ;;  %v1026_v62 = vld [vmem:[#allocation8 + $0x68] sm:$0xff] }
 0x174   : > { %v1634_v15 = vpack.c.bf16 %v709_v13, %v706_v12  ;;  %v705_v16 = vld [vmem:[#allocation7 + $0x5d0] sm:$0xff] }
 0x175   : > { %1585 = vmatpush1.bf16.msra.mxu0 %v1584_v26  ;;  %1681 = vmatpush3.bf16.msra.mxu1 %v1680_v27  ;;  %v664_v26 = vld [vmem:[#allocation7 + $0x488] sm:$0xff]  ;;  %v667_v27 = vld [vmem:[#allocation7 + $0x4a0] sm:$0xff]  ;;  %v711_v12 = vld [vmem:[%s2397_s4] sm:$0x7] }
 0x176   : > { %1587 = vmatprep.subr.bf16.mxu0 %v1586_v30  ;;  %1683 = vmatprep.subr.bf16.mxu1 %v1682_v31  ;;  %v1606_v30 = vpack.c.bf16 %v667_v27, %v664_v26  ;;  %v663_v31 = vld [vmem:[#allocation7 + $0x480] sm:$0xff]  ;;  %v1032_v26 = vld [vmem:[#allocation8 + $0x98] sm:$0xff]  ;;  %v1015_v27 = vld [vmem:[#allocation8 + $0x10] sm:$0xff]  ;;  %v724_v13 = vrot.slane %v711_v12, %v359_v4 }
 0x177   : > { %v1608_v36 = vpack.c.bf16 %v666_v32, %v663_v31  ;;  %v1706_v28 = vpack.c.bf16 %v1032_v26, %v1031_v25  ;;  %v1046_v25 = vld [vmem:[#allocation8 + $0x108] sm:$0xff] }
 0x179   : > { %1589 = vmatpush1.bf16.msra.mxu0 %v1588_v38  ;;  %1685 = vmatpush3.bf16.msra.mxu1 %v1684_v43  ;;  %v672_v38 = vld [vmem:[#allocation7 + $0x4c8] sm:$0xff] }
 0x17a   : > { %1591 = vmatprep.subr.bf16.mxu0 %v1590_v46  ;;  %1687 = vmatprep.subr.bf16.mxu1 %v1686_v47  ;;  %v676_v43 = vld [vmem:[#allocation7 + $0x4e8] sm:$0xff]  ;;  %v1612_v45 = vpack.c.bf16 %v672_v38, %v669_v59  ;;  %v675_v47 = vld [vmem:[#allocation7 + $0x4e0] sm:$0xff]  ;;  %v1019_v38 = vld [vmem:[#allocation8 + $0x30] sm:$0xff] }
 0x17b   : > { %v1614_v46 = vpack.c.bf16 %v679_v44, %v676_v43  ;;  %v1616_v51 = vpack.c.bf16 %v678_v48, %v675_v47  ;;  %v1020_v43 = vld [vmem:[#allocation8 + $0x38] sm:$0xff]  ;;  %v1037_v44 = vld [vmem:[#allocation8 + $0xc0] sm:$0xff] }
 0x17c   : > { %v1021_v48 = vld [vmem:[#allocation8 + $0x40] sm:$0xff] }
 0x17d   : > { %1593 = vmatpush1.bf16.msra.mxu0 %v1592_v54  ;;  %1689 = vmatpush3.bf16.msra.mxu1 %v1688_v55  ;;  %v684_v54 = vld [vmem:[#allocation7 + $0x528] sm:$0xff] }
 0x17e   : > { %1595 = vmatprep.subr.bf16.mxu0 %v1594_v58  ;;  %1691 = vmatprep.subr.bf16.mxu1 %v1690_v60  ;;  %v688_v55 = vld [vmem:[#allocation7 + $0x548] sm:$0xff]  ;;  %v1620_v57 = vpack.c.bf16 %v684_v54, %v681_v53  ;;  %v687_v60 = vld [vmem:[#allocation7 + $0x540] sm:$0xff]  ;;  %v1023_v54 = vld [vmem:[#allocation8 + $0x50] sm:$0xff] }
 0x17f   : > { %v1622_v58 = vpack.c.bf16 %v691_v56, %v688_v55  ;;  %v1624_v1 = vpack.c.bf16 %v690_v61, %v687_v60  ;;  %v1024_v55 = vld [vmem:[#allocation8 + $0x58] sm:$0xff]  ;;  %v1041_v56 = vld [vmem:[#allocation8 + $0xe0] sm:$0xff] }
 0x180   : > { %v1025_v61 = vld [vmem:[#allocation8 + $0x60] sm:$0xff] }
 0x181   : > { %1597 = vmatpush1.bf16.msra.mxu0 %v1596_v5  ;;  %1693 = vmatpush3.bf16.msra.mxu1 %v1692_v6  ;;  %v696_v5 = vld [vmem:[#allocation7 + $0x588] sm:$0xff]  ;;  %v1728_v63 = vpack.c.bf16 %v1026_v62, %v1025_v61 }
 0x182   : > { %1599 = vmatprep.subr.bf16.mxu0 %v1598_v9  ;;  %1695 = vmatprep.subr.bf16.mxu1 %v1694_v10  ;;  %v700_v6 = vld [vmem:[#allocation7 + $0x5a8] sm:$0xff]  ;;  %v1628_v8 = vpack.c.bf16 %v696_v5, %v693_v3  ;;  %v699_v10 = vld [vmem:[#allocation7 + $0x5a0] sm:$0xff]  ;;  %v1027_v5 = vld [vmem:[#allocation8 + $0x70] sm:$0xff] }
 0x183   : > { %v1630_v9 = vpack.c.bf16 %v703_v7, %v700_v6  ;;  %v1632_v14 = vpack.c.bf16 %v702_v11, %v699_v10  ;;  %v1028_v6 = vld [vmem:[#allocation8 + $0x78] sm:$0xff] }
 0x184   : > { %v1732_v7 = vpack.c.bf16 %v1028_v6, %v1027_v5 }
 0x185   : > { %1601 = vmatpush1.bf16.msra.mxu0 %v1600_v18  ;;  %1697 = vmatpush3.bf16.msra.mxu1 %v1696_v19  ;;  %v1636_v18 = vpack.c.bf16 %v708_v17, %v705_v16  ;;  %v1029_v19 = vld [vmem:[#allocation8 + $0x80] sm:$0xff] }
 0x186   : > { %1603 = vmatprep.subr.bf16.mxu0 %v1602_v21  ;;  %1699 = vmatprep.subr.bf16.mxu1 %v1698_v22  ;;  %v1702_v21 = vpack.c.bf16 %v1030_v20, %v1029_v19  ;;  %v1013_v22 = vld [vmem:[#allocation8] sm:$0xff]  ;;  %v716_v19 = vrot.slane %v711_v12, %v351_v40  ;;  %v720_v20 = vrot.slane %v711_v12, %v355_v42  ;;  %v1050_v40 = vld [vmem:[#allocation8 + $0x128] sm:$0xff] }
 0x187   : > { %v1704_v24 = vpack.c.bf16 %v1014_v23, %v1013_v22  ;;  %v1741_v42 = vpack.c.bf16 %v1050_v40, %v1049_v39 }
 0x189   : > { %1605 = vmatpush1.bf16.msra.mxu0 %v1604_v41  ;;  %1701 = vmatpush3.bf16.msra.mxu1 %v1700_v29  ;;  %v1016_v41 = vld [vmem:[#allocation8 + $0x18] sm:$0xff]  ;;  %v1033_v29 = vld [vmem:[#allocation8 + $0xa0] sm:$0xff] }
 0x18a   : > { %1607 = vmatprep.subr.bf16.mxu0 %v1606_v30  ;;  %1703 = vmatprep.subr.bf16.mxu1 %v1702_v21  ;;  %v1034_v30 = vld [vmem:[#allocation8 + $0xa8] sm:$0xff]  ;;  %v1708_v31 = vpack.c.bf16 %v1016_v41, %v1015_v27  ;;  %v1047_v41 = vld [vmem:[#allocation8 + $0x110] sm:$0xff] }
 0x18b   : > { %v1710_v32 = vpack.c.bf16 %v1034_v30, %v1033_v29  ;;  %v1048_v29 = vld [vmem:[#allocation8 + $0x118] sm:$0xff] }
 0x18c   : > { %1005 = vmatmul.mubr.f32.vlgmr.msra.gmra.mrb[4].mxu1 %v517_v35  ;;  %v1738_v30 = vpack.c.bf16 %v1048_v29, %v1047_v41 }
 0x18d   : > { %1609 = vmatpush1.bf16.msra.mxu0 %v1608_v36  ;;  %1705 = vmatpush3.bf16.msra.mxu1 %v1704_v24  ;;  %v1036_v36 = vld [vmem:[#allocation8 + $0xb8] sm:$0xff]  ;;  %v1045_v24 = vld [vmem:[#allocation8 + $0x100] sm:$0xff] }
 0x18e   : > { %1611 = vmatprep.subr.bf16.mxu0 %v1610_v37  ;;  %1707 = vmatprep.subr.bf16.mxu1 %v1706_v28  ;;  %v1712_v37 = vpack.c.bf16 %v1018_v34, %v1017_v33  ;;  %v1735_v28 = vpack.c.bf16 %v1046_v25, %v1045_v24  ;;  %v1053_v34 = vld [vmem:[#allocation8 + $0x140] sm:$0xff] }
 0x191   : > { %1613 = vmatpush1.bf16.msra.mxu0 %v1612_v45  ;;  %1709 = vmatpush3.bf16.msra.mxu1 %v1708_v31  ;;  %v1038_v45 = vld [vmem:[#allocation8 + $0xc8] sm:$0xff]  ;;  %v1051_v31 = vld [vmem:[#allocation8 + $0x130] sm:$0xff] }
 0x192   : > { %1615 = vmatprep.subr.bf16.mxu0 %v1614_v46  ;;  %1711 = vmatprep.subr.bf16.mxu1 %v1710_v32  ;;  %v1716_v46 = vpack.c.bf16 %v1020_v43, %v1019_v38  ;;  %v1718_v47 = vpack.c.bf16 %v1038_v45, %v1037_v44  ;;  %v1052_v32 = vld [vmem:[#allocation8 + $0x138] sm:$0xff]  ;;  %v1057_v38 = vld [vmem:[#allocation8 + $0x160] sm:$0xff]  ;;  %v1058_v43 = vld [vmem:[#allocation8 + $0x168] sm:$0xff] }
 0x193   : > { %v1744_v33 = vpack.c.bf16 %v1052_v32, %v1051_v31  ;;  %v1753_v44 = vpack.c.bf16 %v1058_v43, %v1057_v38  ;;  %v1059_v45 = vld [vmem:[#allocation8 + $0x170] sm:$0xff] }
 0x195   : > { %1617 = vmatpush1.bf16.msra.mxu0 %v1616_v51  ;;  %1713 = vmatpush3.bf16.msra.mxu1 %v1712_v37  ;;  %v1040_v51 = vld [vmem:[#allocation8 + $0xd8] sm:$0xff]  ;;  %v1055_v37 = vld [vmem:[#allocation8 + $0x150] sm:$0xff] }
 0x196   : > { %1619 = vmatprep.subr.bf16.mxu0 %v1618_v52  ;;  %v1720_v52 = vpack.c.bf16 %v1022_v49, %v1021_v48  ;;  %v1722_v53 = vpack.c.bf16 %v1040_v51, %v1039_v50 }
 0x199   : > { %1621 = vmatpush1.bf16.msra.mxu0 %v1620_v57  ;;  %v1042_v57 = vld [vmem:[#allocation8 + $0xe8] sm:$0xff] }
 0x19a   : > { %1623 = vmatprep.subr.bf16.mxu0 %v1622_v58  ;;  %v1724_v58 = vpack.c.bf16 %v1024_v55, %v1023_v54  ;;  %v1726_v60 = vpack.c.bf16 %v1042_v57, %v1041_v56 }
 0x19d   : > { %1625 = vmatpush1.bf16.msra.mxu0 %v1624_v1  ;;  %v1043_v1 = vld [vmem:[#allocation8 + $0xf0] sm:$0xff] }
 0x19e   : > { %1627 = vmatprep.subr.bf16.mxu0 %v1626_v2  ;;  %v1044_v2 = vld [vmem:[#allocation8 + $0xf8] sm:$0xff] }
 0x19f   : > { %v1730_v3 = vpack.c.bf16 %v1044_v2, %v1043_v1 }
 0x1a1   : > { %1629 = vmatpush1.bf16.msra.mxu0 %v1628_v8  ;;  %v2051_v8 = vmov 0.0|0.0  }
 0x1a2   : > { %1631 = vmatprep.subr.bf16.mxu0 %v1630_v9 }
 0x1a5   : > { %1633 = vmatpush1.bf16.msra.mxu0 %v1632_v14 }
 0x1a6   : > { %1635 = vmatprep.subr.bf16.mxu0 %v1634_v15 }
 0x1a9   : > { %1637 = vmatpush1.bf16.msra.mxu0 %v1636_v18 }
 0x1ac   : > { %864 = vmatmul.mubr.f32.vlgmr.msra.gmra.mrb[2].mxu0 %v517_v35  ;;  %v1035_v35 = vld [vmem:[#allocation8 + $0xb0] sm:$0xff] }
 0x1ad   : > { %v1714_v59 = vpack.c.bf16 %v1036_v36, %v1035_v35  ;;  %v1054_v35 = vld [vmem:[#allocation8 + $0x148] sm:$0xff] }
 0x1ae   : > { %v1747_v36 = vpack.c.bf16 %v1054_v35, %v1053_v34 }
 0x1af   : > { %1715 = vmatprep.subr.bf16.mxu1 %v1714_v59  ;;  %v1056_v59 = vld [vmem:[#allocation8 + $0x158] sm:$0xff] }
 0x1b0   : > { %1717 = vmatpush3.bf16.msra.mxu1 %v1716_v46  ;;  %v1060_v46 = vld [vmem:[#allocation8 + $0x178] sm:$0xff] }
 0x1b1   : > { %1719 = vmatprep.subr.bf16.mxu1 %v1718_v47  ;;  %v1756_v47 = vpack.c.bf16 %v1060_v46, %v1059_v45 }
 0x1b4   : > { %1721 = vmatpush3.bf16.msra.mxu1 %v1720_v52  ;;  %v1340_v52 = vld [vmem:[%s2399_s6] ss:$0 sm:$0xff] }
 0x1b5   : > { %1723 = vmatprep.subr.bf16.mxu1 %v1722_v53 }
 0x1b8   : > { %1725 = vmatpush3.bf16.msra.mxu1 %v1724_v58 }
 0x1b9   : > { %1727 = vmatprep.subr.bf16.mxu1 %v1726_v60 }
 0x1bc   : > { %1729 = vmatpush3.bf16.msra.mxu1 %v1728_v63 }
 0x1bd   : > { %1731 = vmatprep.subr.bf16.mxu1 %v1730_v3 }
 0x1c0   : > { %1733 = vmatpush3.bf16.msra.mxu1 %v1732_v7 }
 0x1c1   : > { %1734 = vmatprep.subr.bf16.mxu1 %v2051_v8 }
 0x23f   : > { %v1377_v9 = vpop.f32.mrb[2].mxu1 }
 0x240   : > { %v1378_v10 = vpop.f32.mrb[3].mxu1 }
 0x241   : > { %v1379_v11 = vadd.f32 %v1378_v10, %v1377_v9 }
 0x243   : > { %v937_v16 = vadd.f32 %v1379_v11, %v724_v13 }
 0x25f   : > { %v1412_v14 = vpop.f32.mrb[4].mxu1 }
 0x260   : > { %v1413_v15 = vpop.f32.mrb[5].mxu1 }
 0x261   : > { %v1414_v17 = vadd.f32 %v1413_v15, %v1412_v14 }
 0x263   : > { %v1007_v18 = vadd.f32 %v1414_v17, %v937_v16 }
 0x265   : > { %v1012_v48 = vmax.f32 %v1007_v18, 0.0 }
 0x27f   : > { %v865_v21 = vpop.f32.mrb[2].mxu0 }
 0x280   : > { %v1758_v22 = vadd.f32 %v865_v21, %v716_v19  ;;  %v867_v23 = vpop.f32.mrb[3].mxu0 }
 0x281   : > { %v1759_v26 = vadd.f32 %v867_v23, %v720_v20 }
 0x282   : > { %v1010_v4 = vmax.f32 %v1758_v22, 0.0 }
 0x283   : > { %v1011_v27 = vmax.f32 %v1759_v26, 0.0 }
 0x285   : > { %1132 = vmatprep.mubr.f32.mxu1 %v1011_v27 }
 0x286   : > { %1133 = vmatmul.mubr.f32.vlgmr.msra.gmra.mrb[6].mxu1 %v1010_v4 }
 0x287   : > { %1736 = vmatpush3.bf16.msra.mxu1 %v1735_v28  ;;  %1499 = vmatprep.mubr.msk.f32.mxu1 %vm2052_vm1, %v2050_v0  ;;  %v1750_v0 = vpack.c.bf16 %v1056_v59, %v1055_v37 }
 0x288   : > { %1737 = vmatprep.subr.bf16.mxu1 %v2051_v8 }
 0x28b   : > { %1739 = vmatpush3.bf16.msra.mxu1 %v1738_v30 }
 0x28c   : > { %1740 = vmatprep.subr.bf16.mxu1 %v2051_v8 }
 0x28f   : > { %1742 = vmatpush3.bf16.msra.mxu1 %v1741_v42 }
 0x290   : > { %1743 = vmatprep.subr.bf16.mxu1 %v2051_v8 }
 0x293   : > { %1745 = vmatpush3.bf16.msra.mxu1 %v1744_v33 }
 0x294   : > { %1746 = vmatprep.subr.bf16.mxu1 %v2051_v8 }
 0x297   : > { %1748 = vmatpush3.bf16.msra.mxu1 %v1747_v36 }
 0x298   : > { %1749 = vmatprep.subr.bf16.mxu1 %v2051_v8 }
 0x29b   : > { %1751 = vmatpush3.bf16.msra.mxu1 %v1750_v0 }
 0x29c   : > { %1752 = vmatprep.subr.bf16.mxu1 %v2051_v8 }
 0x29f   : > { %1754 = vmatpush3.bf16.msra.mxu1 %v1753_v44 }
 0x2a0   : > { %1755 = vmatprep.subr.bf16.mxu1 %v2051_v8 }
 0x2a3   : > { %1757 = vmatpush3.bf16.msra.mxu1 %v1756_v47 }
 0x2a6   : > { %1500 = vmatmul.mubr.f32.vlgmr.msra.gmra.mrb[8].mxu1 %v1012_v48 }
 0x359   : > { %v1447_v49 = vpop.f32.mrb[6].mxu1 }
 0x35a   : > { %v1448_v50 = vpop.f32.mrb[7].mxu1 }
 0x35b   : > { %v1449_v51 = vadd.f32 %v1448_v50, %v1447_v49 }
 0x35d   : > { %v1135_v53 = vadd.f32 %v1449_v51, %v1340_v52 }
 0x379   : > { %v1204_v54 = vpop.f32.mrb[8].mxu1 }
 0x37a   : > { %v1205_v55 = vadd.f32 %v1204_v54, %v1135_v53  ;;  %v1501_v56 = vpop.f32.mrb[9].mxu1 }
 0x37c   : > { %1848 = vtanh.f32 %v1205_v55 }
 0x386   : > { %v1849_v57 = vpop.eup %1848 }
 0x387   : > { %v1209_v58 = vmul.f32 2.0, %v1849_v57 }
 0x389   : > { %1210 = vst [vmem:[%s337_s12] sm:$0xff] %v1209_v58 }
 0x38a   : > { %1977 = shalt.err (!%p1974_p4)
}
 0x38b   : > { %s1978_s10 = scalar_lea.hbm %s2349_s21, 128  ;;  %s1982_s1 = scalar_lea.hbm %s2400_s7, 256 }
 0x38c   : > { %p1979_p0 = scmp.ne.s32.totalorder %s2349_s21, %s1978_s10  ;;  %p1983_p8 = scmp.lt.u32.totalorder %s2349_s21, %s2400_s7 }
 0x38d   : > { %p1984_p13 = scmp.lt.u32.totalorder %s1982_s1, %s1978_s10  ;;  %p1986_p10 = scmp.lt.u32.totalorder %s1978_s10, %s2349_s21 }
 0x38e   : > { %p1980_p9 = pnand %p1979_p0, %p2236_p5 }
 0x38f   : > { %p1985_p6 = por %p1984_p13, %p1983_p8 }
 0x390   : > { %p1981_p11 = pneg %p1980_p9 }
 0x391   : > { %p1987_p3 = por %p1986_p10, %p1985_p6 }
 0x393   : > { %p1988_p7 = pnand %p1987_p3, %p1981_p11 }
 0x395   : > { %1991 = shalt.err (!%p1988_p7)
}
 0x396   : > { %1776 = dma.vmem_to_hbm [thread:$0]  (%p2236_p5), %s2351_s23, 128, %s2349_s21, %s1212_s17  }
 0x397 PF: > { %s1237_s12 = sand.u32 1, %s2026_s24   ;;  %p2420_p12 = scmp.ne.s32.totalorder %s2406_s8, 0 }
 0x398   : > { %p2421_p2 = scmp.ge.s32.totalorder %s2038_s27, 2  ;;  %s1238_s14 = scalar_lea.sflag [#allocation4], %s1237_s12 }
 0x39a   : > { %p1793_p1 = pnand %p2421_p2, %p2420_p12 }
 0x39c   : > { %2021 = dma.done.wait (!%p1793_p1), %s1238_s14, 128  }
 0x39d   : > { %2023 = vsyncadd (!%p1793_p1), %s1238_s14, 4294967168  ;;  %p22_p4 = scmp.ge.s32.totalorder %s2222_s13, 4   ;;  %s2422_s24 = smov %s2030_s25 }
 0x39e   : > { %s2423_s25 = smov %s2034_s26  ;;  %s2424_s26 = smov %s2232_s18 }
 0x39f   : > { %s2425_s27 = smov %s2222_s13  ;;  %24 = sbr.rel (!%p22_p4) target bundleno = 9 (0x9), region = 105 }
 0x3a6   :  { %1243 = vsyncpa [#allocation3], 1 }
 0x3a7   :  { %1245 = vsyncpa [#allocation3 + $0x1], 1 }
 0x3a8   :  { %1246 = vsyncpa [#allocation6], 1 }
 0x3a9   :  { %1247 = vsyncpa [#allocation9], 1 }
 0x3aa   :  { %1248 = vsyncpa [#allocation4], 1 }
 0x3ab   :  { %1250 = vsyncpa [#allocation4 + $0x1], 1 }

</bundles_post_ra>
